<compile_context>
chip_gen: v7x
topology: tpu7x:2x2x1
jax: 0.10.0
libtpu: 0.0.40
codegen_flags: <defaults>
</compile_context>

<pallas_src>
import functools

import jax
import jax.numpy as jnp
from jax.experimental import pallas as pl
from jax.experimental.pallas import tpu as pltpu


def _round_up(v, m):
    return (v + m - 1) // m * m


def _choose_tiles(n):
    """Return (padded N, row tile tm, neighbor tile tk).

    Large tiles amortize per-grid-step overhead; keep >=2 row tiles whenever
    possible so the 'parallel' row axis can shard over v7x's two TensorCores.
    Tiles always divide n_pad exactly (no extra N^2 padding beyond 128).
    """
    n_pad = _round_up(n, 128)
    if n_pad <= 128:
        return n_pad, n_pad, n_pad
    tm = 128
    for cand in (1024, 512, 256, 128):
        if n_pad % cand == 0 and n_pad // cand >= 2:
            tm = cand
            break
    tk = min(512, tm)
    return n_pad, tm, tk


def _vmem_limit_bytes(n_pad, tm, tk, f_in_pad, f_out_pad):
    """Rough working-set estimate -> scoped VMEM limit (safe on v7x 64 MiB)."""
    need = (2 * tm * tk * 1                      # int8 adjacency tile, 2 bufs
            + 2 * n_pad * f_in_pad * 2           # resident bf16 node features
            + 2 * tm * f_out_pad * 4             # output tile, 2 bufs (fp32 worst)
            + tm * f_in_pad * 4                  # fp32 aggregation accumulator
            + tm * 128 * 4                       # degree scratch (lane-padded)
            + 2 * 2 * f_in_pad * f_out_pad * 2   # W_l / W_r bf16
            + 2 * f_out_pad * 4)                 # bias
    return int(min(max(need + (4 << 20), 32 << 20), 44 << 20))


def _sage_conv_kernel(adj_ref, h_ref, wl_ref, wr_ref, b_ref, out_ref,
                      acc_ref, deg_ref, *, apply_relu, tm, tk):
    """One SAGEConv layer, tiled over (row tile i, neighbor tile k).

    acc_ref accumulates adj[i, k] @ x[k] over k in fp32 and deg_ref the row
    degrees; on the last k step the epilogue runs two MXU dots against
    W_l / W_r and applies the fp32 1/deg scale after the W_l matmul.
    """
    i = pl.program_id(0)
    k = pl.program_id(1)

    @pl.when(k == 0)
    def _():
        acc_ref[...] = jnp.zeros_like(acc_ref)
        deg_ref[...] = jnp.zeros_like(deg_ref)

    # int8 {0,1} adjacency tile -> bf16 (exact); the widen is VPU work hidden
    # under the dominant adjacency DMA.
    adj_f32 = adj_ref[...].astype(jnp.float32)
    adj = adj_f32.astype(jnp.bfloat16)

    # Neighbor slice of the VMEM-resident node features (no HBM re-stream).
    ks = pl.multiple_of(k * tk, tk)
    xk = h_ref[pl.ds(ks, tk), :]

    # Sum-aggregation on the MXU (bf16 x bf16 -> fp32 accumulate); row degrees
    # on the XLU (fp32 reduce), both hidden under the adjacency stream.
    acc_ref[...] += jnp.dot(adj, xk, preferred_element_type=jnp.float32)
    deg_ref[...] += jnp.sum(adj_f32, axis=-1, keepdims=True)

    @pl.when(k == pl.num_programs(1) - 1)
    def _():
        inv_deg = 1.0 / jnp.maximum(deg_ref[...], 1.0)      # (tm, 1) fp32
        agg = acc_ref[...].astype(jnp.bfloat16)             # (tm, F_in_pad)
        istart = pl.multiple_of(i * tm, tm)
        xr = h_ref[pl.ds(istart, tm), :]                    # (tm, F_in_pad)
        # D^{-1}(A x) W_l == D^{-1}((A x) W_l): scale the smaller F_out tile.
        out = (jnp.dot(agg, wl_ref[...], preferred_element_type=jnp.float32)
               * inv_deg
               + jnp.dot(xr, wr_ref[...], preferred_element_type=jnp.float32)
               + b_ref[...])
        if apply_relu:
            out = jnp.maximum(out, 0.0)
        out_ref[...] = out.astype(out_ref.dtype)


def sage_conv(h, adj_i8, wl, wr, b, *, apply_relu, out_dtype, tm, tk):
    """Tiled pallas_call for one SAGEConv layer on padded operands."""
    n_pad, f_in_pad = h.shape
    f_out_pad = wl.shape[1]
    grid = (n_pad // tm, n_pad // tk)

    kernel = functools.partial(_sage_conv_kernel, apply_relu=apply_relu,
                               tm=tm, tk=tk)
    return pl.pallas_call(
        kernel,
        out_shape=jax.ShapeDtypeStruct((n_pad, f_out_pad), out_dtype),
        grid_spec=pltpu.PrefetchScalarGridSpec(
            num_scalar_prefetch=0,
            grid=grid,
            in_specs=[
                # int8 adjacency tile (rows i, neighbor cols k) -- the only
                # per-step HBM stream.
                pl.BlockSpec((tm, tk), lambda i, k: (i, k)),
                # VMEM-resident node features (full block, constant index map
                # -> DMA'd once, sliced in-kernel for both xk and xr).
                pl.BlockSpec((n_pad, f_in_pad), lambda i, k: (0, 0)),
                # W_l, W_r (bf16, lane-padded) and bias: constant blocks.
                pl.BlockSpec((f_in_pad, f_out_pad), lambda i, k: (0, 0)),
                pl.BlockSpec((f_in_pad, f_out_pad), lambda i, k: (0, 0)),
                pl.BlockSpec((1, f_out_pad), lambda i, k: (0, 0)),
            ],
            out_specs=pl.BlockSpec((tm, f_out_pad), lambda i, k: (i, 0)),
            scratch_shapes=[pltpu.VMEM((tm, f_in_pad), jnp.float32),
                            pltpu.VMEM((tm, 1), jnp.float32)],
        ),
        compiler_params=pltpu.CompilerParams(
            dimension_semantics=("parallel", "arbitrary"),
            vmem_limit_bytes=_vmem_limit_bytes(n_pad, tm, tk, f_in_pad,
                                               f_out_pad),
        ),
    )(adj_i8, h, wl, wr, b)


def init_sage_params(key, in_channels, hidden_channels, out_channels,
                     num_layers):
    """Deterministic xavier-normal-ish init for every SAGEConv layer."""
    dims = []
    if num_layers == 1:
        dims.append((in_channels, out_channels))
    else:
        dims.append((in_channels, hidden_channels))
        for _ in range(num_layers - 2):
            dims.append((hidden_channels, hidden_channels))
        dims.append((hidden_channels, out_channels))

    params = []
    for (f_in, f_out) in dims:
        key, k1, k2 = jax.random.split(key, 3)
        std = (2.0 / (f_in + f_out)) ** 0.5
        wl = std * jax.random.normal(k1, (f_in, f_out), jnp.float32)
        wr = std * jax.random.normal(k2, (f_in, f_out), jnp.float32)
        b = jnp.zeros((1, f_out), jnp.float32)
        params.append((wl, wr, b))
    return params


def _prepare_params(params):
    """Zero-pad feature dims to 128 lanes; W_l / W_r as separate bf16 mats."""
    packed = []
    for wl, wr, b in params:
        f_in, f_out = wl.shape
        f_in_p = _round_up(f_in, 128)
        f_out_p = _round_up(f_out, 128)
        wl_p = jnp.zeros((f_in_p, f_out_p), jnp.bfloat16
                         ).at[:f_in, :f_out].set(wl.astype(jnp.bfloat16))
        wr_p = jnp.zeros((f_in_p, f_out_p), jnp.bfloat16
                         ).at[:f_in, :f_out].set(wr.astype(jnp.bfloat16))
        b_p = jnp.zeros((1, f_out_p), jnp.float32).at[:, :f_out].set(b)
        packed.append((wl_p, wr_p, b_p))
    return packed


def sage_forward(x, adj, params):
    """SAGE.forward: conv -> relu (-> dropout=id) per layer, last conv raw."""
    n = x.shape[0]
    out_channels = params[-1][0].shape[1]
    n_pad, tm, tk = _choose_tiles(n)

    # Single narrow preprocessing pass over the adjacency: 0/1 fp32 -> int8
    # (exact) + pad.  Degrees are computed inside the kernel from the tiles.
    adj_i8 = jnp.pad(adj.astype(jnp.int8), ((0, n_pad - n), (0, n_pad - n)))

    packed = _prepare_params(params)
    f_in0 = params[0][0].shape[0]
    f_in0_p = _round_up(f_in0, 128)
    h = jnp.pad(x, ((0, n_pad - n), (0, f_in0_p - f_in0))).astype(jnp.bfloat16)

    n_layers = len(packed)
    for li, (wl, wr, b) in enumerate(packed):
        last = (li == n_layers - 1)
        h = sage_conv(h, adj_i8, wl, wr, b,
                      apply_relu=not last,
                      out_dtype=jnp.float32 if last else jnp.bfloat16,
                      tm=tm, tk=tk)
    return h[:n, :out_channels]


def sage_forward_ref(x, adj, params):
    """Pure-JAX fp32 reference for correctness checking."""
    deg = jnp.sum(adj, axis=1, keepdims=True)
    inv_deg = 1.0 / jnp.maximum(deg, 1.0)
    h = x
    for i, (wl, wr, b) in enumerate(params):
        agg = (adj @ h) * inv_deg
        h_new = agg @ wl + h @ wr + b
        if i < len(params) - 1:
            h_new = jnp.maximum(h_new, 0.0)
        h = h_new
    return h


if __name__ == "__main__":
    key = jax.random.PRNGKey(0)

    def run_case(num_nodes, in_channels, hidden_channels, out_channels,
                 num_layers, case_key):
        k_x, k_adj, k_param = jax.random.split(case_key, 3)
        x = jax.random.normal(k_x, (num_nodes, in_channels), jnp.float32)
        adj = (jax.random.uniform(k_adj, (num_nodes, num_nodes)) < 0.3).astype(
            jnp.float32)
        params = init_sage_params(k_param, in_channels, hidden_channels,
                                  out_channels, num_layers)

        out = jax.block_until_ready(sage_forward(x, adj, params))
        assert out.shape == (num_nodes, out_channels)
        assert jnp.all(jnp.isfinite(out))

        ref = sage_forward_ref(x, adj, params)
        err = jnp.max(jnp.abs(out - ref))
        scale = jnp.max(jnp.abs(ref))
        assert err <= 0.05 * scale + 1e-2, (float(err), float(scale))
        return out

    # Small graph: single-tile grid path.
    run_case(16, 8, 32, 16, 3, jax.random.fold_in(key, 0))
    # Larger graph: exercises the multi-tile (row, neighbor) grid.
    run_case(640, 8, 32, 16, 3, jax.random.fold_in(key, 1))

    print("KERNEL_OK")
</pallas_src>

<mosaic_0001>
module attributes {stable_mosaic.version = 11 : i64} {
  func.func @_sage_conv_kernel(%arg0: i32, %arg1: i32, %arg2: memref<128x128xi8, #tpu.memory_space<vmem>>, %arg3: memref<128x128xbf16, #tpu.memory_space<vmem>>, %arg4: memref<128x128xbf16, #tpu.memory_space<vmem>>, %arg5: memref<128x128xbf16, #tpu.memory_space<vmem>>, %arg6: memref<1x128xf32, #tpu.memory_space<vmem>>, %arg7: memref<128x128xbf16, #tpu.memory_space<vmem>>, %arg8: memref<128x128xf32, #tpu.memory_space<vmem>>, %arg9: memref<128x1xf32, #tpu.memory_space<vmem>>) attributes {dimension_semantics = [#tpu.dimension_semantics<parallel>, #tpu.dimension_semantics<arbitrary>], iteration_bounds = array<i64: 1, 1>, scalar_prefetch = 0 : i64, scratch_operands = 2 : i64, tpu.core_type = #tpu.core_type<tc>, window_params = [{transform_indices = @transform_0, window_bounds = array<i64: 128, 128>}, {pipeline_mode = #tpu.pipeline_mode<synchronous>, transform_indices = @transform_1, window_bounds = array<i64: 128, 128>}, {pipeline_mode = #tpu.pipeline_mode<synchronous>, transform_indices = @transform_2, window_bounds = array<i64: 128, 128>}, {pipeline_mode = #tpu.pipeline_mode<synchronous>, transform_indices = @transform_3, window_bounds = array<i64: 128, 128>}, {pipeline_mode = #tpu.pipeline_mode<synchronous>, transform_indices = @transform_4, window_bounds = array<i64: 1, 128>}, {transform_indices = @transform_5, window_bounds = array<i64: 128, 128>}]} {
    %c0_i32 = arith.constant 0 : i32
    %0 = arith.cmpi eq, %arg1, %c0_i32 : i32
    %1 = arith.extui %0 : i1 to i32
    %c0_i32_0 = arith.constant 0 : i32
    %2 = arith.cmpi ne, %1, %c0_i32_0 : i32
    scf.if %2 {
      %cst_14 = arith.constant 0.000000e+00 : f32
      %22 = vector.broadcast %cst_14 : f32 to vector<128x128xf32>
      %c0_15 = arith.constant 0 : index
      %c0_16 = arith.constant 0 : index
      %23 = vector.load %arg8[%c0_15, %c0_16] : memref<128x128xf32, #tpu.memory_space<vmem>>, vector<128x128xf32>
      tpu.vector_store %arg8[%c0_15, %c0_16], %22 {strides = array<i32>} : memref<128x128xf32, #tpu.memory_space<vmem>>, vector<128x128xf32>,
      %cst_17 = arith.constant 0.000000e+00 : f32
      %24 = vector.broadcast %cst_17 : f32 to vector<128x1xf32>
      %c0_18 = arith.constant 0 : index
      %c0_19 = arith.constant 0 : index
      %25 = vector.load %arg9[%c0_18, %c0_19] : memref<128x1xf32, #tpu.memory_space<vmem>>, vector<128x1xf32>
      tpu.vector_store %arg9[%c0_18, %c0_19], %24 {strides = array<i32>} : memref<128x1xf32, #tpu.memory_space<vmem>>, vector<128x1xf32>,
    } else {
    }
    %c0 = arith.constant 0 : index
    %c0_1 = arith.constant 0 : index
    %3 = vector.load %arg2[%c0, %c0_1] : memref<128x128xi8, #tpu.memory_space<vmem>>, vector<128x128xi8>
    %4 = arith.sitofp %3 : vector<128x128xi8> to vector<128x128xf32>
    %5 = arith.truncf %4 : vector<128x128xf32> to vector<128x128xbf16>
    %c128_i32 = arith.constant 128 : i32
    %6 = arith.muli %arg1, %c128_i32 : i32
    %7 = tpu.assume_multiple %6, 128 : i32
    %8 = arith.index_cast %7 : i32 to index
    %c0_2 = arith.constant 0 : index
    %9 = vector.load %arg3[%8, %c0_2] : memref<128x128xbf16, #tpu.memory_space<vmem>>, vector<128x128xbf16>
    %c0_3 = arith.constant 0 : index
    %c0_4 = arith.constant 0 : index
    %10 = vector.load %arg8[%c0_3, %c0_4] : memref<128x128xf32, #tpu.memory_space<vmem>>, vector<128x128xf32>
    %cst = arith.constant dense<0.000000e+00> : vector<128x128xf32>
    %11 = tpu.matmul %5, %9, %cst {dimension_numbers = #tpu.dot_dimension_numbers<[1], [0], [0], [1], [0, 0, 1, 1], [], []>} : vector<128x128xbf16>, vector<128x128xbf16>, vector<128x128xf32> -> vector<128x128xf32>
    %12 = arith.addf %10, %11 : vector<128x128xf32>
    %c0_5 = arith.constant 0 : index
    %c0_6 = arith.constant 0 : index
    %13 = vector.load %arg8[%c0_5, %c0_6] : memref<128x128xf32, #tpu.memory_space<vmem>>, vector<128x128xf32>
    tpu.vector_store %arg8[%c0_5, %c0_6], %12 {strides = array<i32>} : memref<128x128xf32, #tpu.memory_space<vmem>>, vector<128x128xf32>,
    %c0_7 = arith.constant 0 : index
    %c0_8 = arith.constant 0 : index
    %14 = vector.load %arg9[%c0_7, %c0_8] : memref<128x1xf32, #tpu.memory_space<vmem>>, vector<128x1xf32>
    %cst_9 = arith.constant dense<0.000000e+00> : vector<128xf32>
    %15 = vector.multi_reduction <add>, %4, %cst_9 [1] : vector<128x128xf32> to vector<128xf32>
    %16 = vector.shape_cast %15 : vector<128xf32> to vector<128x1xf32>
    %17 = arith.addf %14, %16 : vector<128x1xf32>
    %c0_10 = arith.constant 0 : index
    %c0_11 = arith.constant 0 : index
    %18 = vector.load %arg9[%c0_10, %c0_11] : memref<128x1xf32, #tpu.memory_space<vmem>>, vector<128x1xf32>
    tpu.vector_store %arg9[%c0_10, %c0_11], %17 {strides = array<i32>} : memref<128x1xf32, #tpu.memory_space<vmem>>, vector<128x1xf32>,
    %c0_i32_12 = arith.constant 0 : i32
    %19 = arith.cmpi eq, %arg1, %c0_i32_12 : i32
    %20 = arith.extui %19 : i1 to i32
    %c0_i32_13 = arith.constant 0 : i32
    %21 = arith.cmpi ne, %20, %c0_i32_13 : i32
    scf.if %21 {
      %c0_14 = arith.constant 0 : index
      %c0_15 = arith.constant 0 : index
      %22 = vector.load %arg9[%c0_14, %c0_15] : memref<128x1xf32, #tpu.memory_space<vmem>>, vector<128x1xf32>
      %cst_16 = arith.constant 1.000000e+00 : f32
      %23 = vector.broadcast %cst_16 : f32 to vector<128x1xf32>
      %24 = arith.maximumf %22, %23 : vector<128x1xf32>
      %cst_17 = arith.constant 1.000000e+00 : f32
      %25 = vector.broadcast %cst_17 : f32 to vector<128x1xf32>
      %26 = arith.divf %25, %24 : vector<128x1xf32>
      %c0_18 = arith.constant 0 : index
      %c0_19 = arith.constant 0 : index
      %27 = vector.load %arg8[%c0_18, %c0_19] : memref<128x128xf32, #tpu.memory_space<vmem>>, vector<128x128xf32>
      %28 = arith.truncf %27 : vector<128x128xf32> to vector<128x128xbf16>
      %c128_i32_20 = arith.constant 128 : i32
      %29 = arith.muli %arg0, %c128_i32_20 : i32
      %30 = tpu.assume_multiple %29, 128 : i32
      %31 = arith.index_cast %30 : i32 to index
      %c0_21 = arith.constant 0 : index
      %32 = vector.load %arg3[%31, %c0_21] : memref<128x128xbf16, #tpu.memory_space<vmem>>, vector<128x128xbf16>
      %c0_22 = arith.constant 0 : index
      %c0_23 = arith.constant 0 : index
      %33 = vector.load %arg4[%c0_22, %c0_23] : memref<128x128xbf16, #tpu.memory_space<vmem>>, vector<128x128xbf16>
      %cst_24 = arith.constant dense<0.000000e+00> : vector<128x128xf32>
      %34 = tpu.matmul %28, %33, %cst_24 {dimension_numbers = #tpu.dot_dimension_numbers<[1], [0], [0], [1], [0, 0, 1, 1], [], []>} : vector<128x128xbf16>, vector<128x128xbf16>, vector<128x128xf32> -> vector<128x128xf32>
      %35 = vector.broadcast %26 : vector<128x1xf32> to vector<128x128xf32>
      %36 = arith.mulf %34, %35 : vector<128x128xf32>
      %c0_25 = arith.constant 0 : index
      %c0_26 = arith.constant 0 : index
      %37 = vector.load %arg5[%c0_25, %c0_26] : memref<128x128xbf16, #tpu.memory_space<vmem>>, vector<128x128xbf16>
      %cst_27 = arith.constant dense<0.000000e+00> : vector<128x128xf32>
      %38 = tpu.matmul %32, %37, %cst_27 {dimension_numbers = #tpu.dot_dimension_numbers<[1], [0], [0], [1], [0, 0, 1, 1], [], []>} : vector<128x128xbf16>, vector<128x128xbf16>, vector<128x128xf32> -> vector<128x128xf32>
      %39 = arith.addf %36, %38 : vector<128x128xf32>
      %c0_28 = arith.constant 0 : index
      %c0_29 = arith.constant 0 : index
      %40 = vector.load %arg6[%c0_28, %c0_29] : memref<1x128xf32, #tpu.memory_space<vmem>>, vector<1x128xf32>
      %41 = vector.broadcast %40 : vector<1x128xf32> to vector<128x128xf32>
      %42 = arith.addf %39, %41 : vector<128x128xf32>
      %cst_30 = arith.constant 0.000000e+00 : f32
      %43 = vector.broadcast %cst_30 : f32 to vector<128x128xf32>
      %44 = arith.maximumf %42, %43 : vector<128x128xf32>
      %45 = arith.truncf %44 : vector<128x128xf32> to vector<128x128xbf16>
      %c0_31 = arith.constant 0 : index
      %c0_32 = arith.constant 0 : index
      %46 = vector.load %arg7[%c0_31, %c0_32] : memref<128x128xbf16, #tpu.memory_space<vmem>>, vector<128x128xbf16>
      tpu.vector_store %arg7[%c0_31, %c0_32], %45 {strides = array<i32>} : memref<128x128xbf16, #tpu.memory_space<vmem>>, vector<128x128xbf16>,
    } else {
    }
    return
  }
  func.func @transform_0(%arg0: i32, %arg1: i32) -> (i32, i32) {
    %c0_i32 = arith.constant 0 : i32
    return %arg0, %arg1 : i32, i32
  }
  func.func @transform_1(%arg0: i32, %arg1: i32) -> (i32, i32) {
    %c0_i32 = arith.constant 0 : i32
    %c0_i32_0 = arith.constant 0 : i32
    %c0_i32_1 = arith.constant 0 : i32
    return %c0_i32, %c0_i32_0 : i32, i32
  }
  func.func @transform_2(%arg0: i32, %arg1: i32) -> (i32, i32) {
    %c0_i32 = arith.constant 0 : i32
    %c0_i32_0 = arith.constant 0 : i32
    %c0_i32_1 = arith.constant 0 : i32
    return %c0_i32, %c0_i32_0 : i32, i32
  }
  func.func @transform_3(%arg0: i32, %arg1: i32) -> (i32, i32) {
    %c0_i32 = arith.constant 0 : i32
    %c0_i32_0 = arith.constant 0 : i32
    %c0_i32_1 = arith.constant 0 : i32
    return %c0_i32, %c0_i32_0 : i32, i32
  }
  func.func @transform_4(%arg0: i32, %arg1: i32) -> (i32, i32) {
    %c0_i32 = arith.constant 0 : i32
    %c0_i32_0 = arith.constant 0 : i32
    %c0_i32_1 = arith.constant 0 : i32
    return %c0_i32, %c0_i32_0 : i32, i32
  }
  func.func @transform_5(%arg0: i32, %arg1: i32) -> (i32, i32) {
    %c0_i32 = arith.constant 0 : i32
    %c0_i32_0 = arith.constant 0 : i32
    return %arg0, %c0_i32 : i32, i32
  }
}

</mosaic_0001>

<bundles_post_ra>
// kernel: tpu_custom_call.1
= control target key start
LH: loop header
LB: loop body
LE: loop exit
PB: predicated region body
PF: predicated region fallthrough
CT: control target
= control target key end

     0   :  { %10 = vsyncpa [#allocation5], 0  ;;  %s1901_s0 = inlined_call_operand.hbm [shape: s8[128,128], index: 0, kind: input, shape index: {}]   ;;  %s1902_s1 = inlined_call_operand.hbm [shape: bf16[128,128], index: 1, kind: input, shape index: {}]   ;;  %s1903_s2 = inlined_call_operand.hbm [shape: bf16[128,128], index: 2, kind: input, shape index: {}]   ;;  %s1904_s3 = inlined_call_operand.hbm [shape: bf16[128,128], index: 3, kind: input, shape index: {}]   ;;  %s1905_s4 = inlined_call_operand.vmem [shape: f32[1,128], index: 4, kind: input, shape index: {}]   ;;  %s1906_s5 = inlined_call_operand.hbm [shape: bf16[128,128], index: 5, kind: output, shape index: {}]  }
   0x1   :  { %11 = vsyncpa [#allocation8], 0 }
   0x2   :  { %12 = vsyncpa [#allocation11], 0 }
   0x3   :  { %13 = vsyncpa [#allocation6], 0  ;;  %s1656_s18 = smov [#allocation7]   ;;  %s1538_s22 = scalar_lea.hbm %s1902_s1, 1024 }
   0x4   :  { %s31_s19 = sshll.u32 %s1656_s18, 4  ;;  %p1539_p0 = scmp.ne.s32.totalorder %s1902_s1, %s1538_s22  ;;  %s32_s19 = int_to_ptr.vmem [resolvable:$true] %s31_s19 }
   0x5   :  { %p1542_p1 = scmp.lt.u32.totalorder %s1538_s22, %s1902_s1 }
   0x7   :  { %p1544_p2 = pnand %p1542_p1, %p1539_p0 }
   0x9   :  { %1547 = shalt.err (!%p1544_p2)
}
   0xa   :  { %s1548_s27 = scalar_lea.vmem %s32_s19, 1024  ;;  %p1553_p4 = scmp.lt.s32.totalorder %s32_s19, %s32_s19 }
   0xb   :  { %p1549_p3 = scmp.ne.s32.totalorder %s32_s19, %s1548_s27  ;;  %p1554_p5 = scmp.lt.s32.totalorder %s1548_s27, %s1548_s27 }
   0xd   :  { %p1555_p6 = por %p1554_p5, %p1553_p4 }
   0xf   :  { %p1556_p7 = pnand %p1555_p6, %p1549_p3 }
  0x11   :  { %1559 = shalt.err (!%p1556_p7)
}
  0x12   :  { %s1657_s28 = smov 64   ;;  %s1658_s29 = smov 4  }
  0x13   :  { %37 = dma.hbm_to_vmem [thread:$0]  %s1902_s1, 1024, %s32_s19, [#allocation8], %s1657_s28, %s1657_s28, %s1658_s29  }
  0x14   :  { %s1659_s7 = smov [#allocation4]   ;;  %s1560_s11 = scalar_lea.hbm %s1901_s0, 512 }
  0x15   :  { %s19_s8 = sshll.u32 %s1659_s7, 4  ;;  %p1561_p8 = scmp.ne.s32.totalorder %s1901_s0, %s1560_s11  ;;  %s20_s8 = int_to_ptr.vmem [resolvable:$true] %s19_s8 }
  0x16   :  { %p1564_p9 = scmp.lt.u32.totalorder %s1560_s11, %s1901_s0 }
  0x18   :  { %p1566_p10 = pnand %p1564_p9, %p1561_p8 }
  0x1a   :  { %1569 = shalt.err (!%p1566_p10)
}
  0x1b   :  { %s1570_s16 = scalar_lea.vmem %s20_s8, 512  ;;  %p1575_p12 = scmp.lt.s32.totalorder %s20_s8, %s20_s8 }
  0x1c   :  { %p1571_p11 = scmp.ne.s32.totalorder %s20_s8, %s1570_s16  ;;  %p1576_p13 = scmp.lt.s32.totalorder %s1570_s16, %s1570_s16 }
  0x1e   :  { %p1577_p0 = por %p1576_p13, %p1575_p12 }
  0x20   :  { %p1578_p1 = pnand %p1577_p0, %p1571_p11 }
  0x22   :  { %1581 = shalt.err (!%p1578_p1)
}
  0x23   :  { %s1660_s1 = smov 128   ;;  %s1661_s17 = smov 8  }
  0x24   :  { %25 = dma.hbm_to_vmem [thread:$0]  %s1901_s0, 512, %s20_s8, [#allocation5], %s1660_s1, %s1660_s1, %s1661_s17  }
  0x25   :  { %s1662_s20 = smov [#allocation9]   ;;  %s1663_s22 = smov [#allocation10]  }
  0x26   :  { %s43_s21 = sshll.u32 %s1662_s20, 4  ;;  %s55_s23 = sshll.u32 %s1663_s22, 4  ;;  %s44_s21 = int_to_ptr.vmem [resolvable:$true] %s43_s21  ;;  %s1724_s23 = int_to_ptr.vmem [resolvable:$true] %s55_s23 }
  0x27   :  { %s1582_s26 = scalar_lea.hbm %s1903_s2, 1024 }
  0x28   :  { %p1583_p2 = scmp.ne.s32.totalorder %s1903_s2, %s1582_s26  ;;  %p1586_p3 = scmp.lt.u32.totalorder %s1582_s26, %s1903_s2 }
  0x2a   :  { %p1588_p4 = pnand %p1586_p3, %p1583_p2 }
  0x2c   :  { %1591 = shalt.err (!%p1588_p4)
}
  0x2d   :  { %s1592_s0 = scalar_lea.vmem %s44_s21, 1024  ;;  %p1597_p6 = scmp.lt.s32.totalorder %s44_s21, %s44_s21 }
  0x2e   :  { %p1593_p5 = scmp.ne.s32.totalorder %s44_s21, %s1592_s0  ;;  %p1598_p7 = scmp.lt.s32.totalorder %s1592_s0, %s1592_s0 }
  0x30   :  { %p1599_p8 = por %p1598_p7, %p1597_p6 }
  0x32   :  { %p1600_p9 = pnand %p1599_p8, %p1593_p5 }
  0x34   :  { %1603 = shalt.err (!%p1600_p9)
}
  0x35   :  { %49 = dma.hbm_to_vmem [thread:$0]  %s1903_s2, 1024, %s44_s21, [#allocation8], %s1657_s28, %s1657_s28, %s1658_s29  }
  0x36   :  { %s1604_s12 = scalar_lea.hbm %s1904_s3, 1024 }
  0x37   :  { %p1605_p10 = scmp.ne.s32.totalorder %s1904_s3, %s1604_s12  ;;  %p1608_p11 = scmp.lt.u32.totalorder %s1604_s12, %s1904_s3 }
  0x39   :  { %p1610_p12 = pnand %p1608_p11, %p1605_p10 }
  0x3b   :  { %1613 = shalt.err (!%p1610_p12)
}
  0x3c   :  { %s1614_s1 = scalar_lea.vmem %s1724_s23, 1024  ;;  %p1619_p0 = scmp.lt.s32.totalorder %s1724_s23, %s1724_s23 }
  0x3d   :  { %p1615_p13 = scmp.ne.s32.totalorder %s1724_s23, %s1614_s1  ;;  %p1620_p1 = scmp.lt.s32.totalorder %s1614_s1, %s1614_s1 }
  0x3f   :  { %p1621_p2 = por %p1620_p1, %p1619_p0 }
  0x41   :  { %p1622_p3 = pnand %p1621_p2, %p1615_p13 }
  0x43   :  { %1625 = shalt.err (!%p1622_p3)
}
  0x44   :  { %61 = dma.hbm_to_vmem [thread:$0]  %s1904_s3, 1024, %s1724_s23, [#allocation11], %s1657_s28, %s1657_s28, %s1658_s29  }
  0x45   :  { %1648 = dma.done.wait [#allocation5], 512  }
  0x46   :  { %1649 = vsyncadd [#allocation5], 4294966784 }
  0x47   :  { %1650 = dma.done.wait [#allocation8], 2048  }
  0x48   :  { %1651 = vsyncadd [#allocation8], 4294965248 }
  0x49   :  { %1652 = dma.done.wait [#allocation11], 1024  }
  0x4a   :  { %1653 = vsyncadd [#allocation11], 4294966272  ;;  %v1474_v0 = vld [vmem:[#allocation7] sm:$0xff]   ;;  %v1475_v1 = vld [vmem:[#allocation7 + $0x8] sm:$0xff]   ;;  %vm97_vm0 = vcmask 7168  }
  0x4b   :  { %1349 = vmatprep.subr.bf16.mxu0 %v1474_v0  ;;  %v1476_v2 = vld [vmem:[#allocation7 + $0x10] sm:$0xff]   ;;  %v1477_v3 = vld [vmem:[#allocation7 + $0x18] sm:$0xff]   ;;  %v1761_v4 = vld [vmem:[#allocation4] sm:$0xff] }
  0x4c   :  { %1350 = vmatpush3.bf16.msra.mxu0 %v1474_v0  ;;  %v150_v5 = vunpack.c.l.s8.bf16 %v1761_v4  ;;  %v1482_v6 = vld [vmem:[#allocation9] sm:$0xff]   ;;  %v118_v8 = vunpack.c.0.s8 %v1761_v4  ;;  %v119_v9 = vunpack.c.1.s8 %v1761_v4  ;;  %v120_v10 = vunpack.c.2.s8 %v1761_v4  ;;  %v1484_v12 = vld [vmem:[#allocation9 + $0x8] sm:$0xff]   ;;  %v1486_v16 = vld [vmem:[#allocation9 + $0x10] sm:$0xff]  }
  0x4d   :  { %1351 = vmatprep.subr.bf16.mxu0 %v1475_v1  ;;  %v1478_v7 = vld [vmem:[#allocation7 + $0x20] sm:$0xff]   ;;  %v121_v11 = vunpack.c.3.s8 %v1761_v4  ;;  %1381 = vmatprep.subr.bf16.mxu1 %v1482_v6  ;;  %v1768_v13 = vld [vmem:[#allocation4 + $0x8] sm:$0xff]  ;;  %v1488_v22 = vld [vmem:[#allocation9 + $0x18] sm:$0xff]   ;;  %v151_v41 = vunpack.c.h.s8.bf16 %v1761_v4 }
  0x4e   :  { %1365 = vmatprep.mubr.bf16.mxu0 %v150_v5  ;;  %v134_v14 = vcvt.s32.f32 %v118_v8  ;;  %v136_v15 = vcvt.s32.f32 %v120_v10  ;;  %1382 = vmatpush3.bf16.msra.mxu1 %v1482_v6  ;;  %v135_v17 = vcvt.s32.f32 %v119_v9  ;;  %v122_v18 = vunpack.c.0.s8 %v1768_v13  ;;  %v1479_v19 = vld [vmem:[#allocation7 + $0x28] sm:$0xff]   ;;  %v1480_v25 = vld [vmem:[#allocation7 + $0x30] sm:$0xff]   ;;  %v1481_v29 = vld [vmem:[#allocation7 + $0x38] sm:$0xff]  }
  0x4f   :  { %1383 = vmatprep.subr.bf16.mxu1 %v1484_v12  ;;  %v137_v20 = vcvt.s32.f32 %v121_v11  ;;  %v123_v21 = vunpack.c.1.s8 %v1768_v13  ;;  %v124_v24 = vunpack.c.2.s8 %v1768_v13  ;;  %v125_v27 = vunpack.c.3.s8 %v1768_v13  ;;  %v1774_v28 = vld [vmem:[#allocation4 + $0x10] sm:$0xff]  ;;  %v1490_v30 = vld [vmem:[#allocation9 + $0x20] sm:$0xff]   ;;  %v1492_v35 = vld [vmem:[#allocation9 + $0x28] sm:$0xff]  }
  0x50   :  { %1352 = vmatpush3.bf16.msra.mxu0 %v1475_v1  ;;  %388 = vadd.xlane.f32.xlu0 %v134_v14  ;;  %v138_v23 = vcvt.s32.f32 %v122_v18  ;;  %v126_v32 = vunpack.c.0.s8 %v1774_v28  ;;  %v127_v34 = vunpack.c.1.s8 %v1774_v28  ;;  %v1778_v36 = vld [vmem:[#allocation10] sm:$0xff]   ;;  %v128_v38 = vunpack.c.2.s8 %v1774_v28  ;;  %v117_v42 = vld [vmem:[#allocation4 + $0x18] sm:$0xff]  ;;  %v1494_v43 = vld [vmem:[#allocation9 + $0x30] sm:$0xff]  }
  0x51   :  { %1353 = vmatprep.subr.bf16.mxu0 %v1476_v2  ;;  %392 = vadd.xlane.f32.xlu1 %v136_v15  ;;  %v139_v26 = vcvt.s32.f32 %v123_v21  ;;  %v140_v31 = vcvt.s32.f32 %v124_v24  ;;  %v141_v33 = vcvt.s32.f32 %v125_v27  ;;  %v129_v40 = vunpack.c.3.s8 %v1774_v28  ;;  %v1785_v49 = vld [vmem:[#allocation10 + $0x8] sm:$0xff]   ;;  %v1789_v54 = vld [vmem:[#allocation10 + $0x10] sm:$0xff]   ;;  %v1795_v59 = vld [vmem:[#allocation10 + $0x18] sm:$0xff]  }
  0x52   :  { %1384 = vmatpush3.bf16.msra.mxu1 %v1484_v12  ;;  %v142_v37 = vcvt.s32.f32 %v126_v32  ;;  %v143_v39 = vcvt.s32.f32 %v127_v34  ;;  %v152_v44 = vunpack.c.l.s8.bf16 %v1768_v13  ;;  %v144_v45 = vcvt.s32.f32 %v128_v38  ;;  %v1799_v60 = vld [vmem:[#allocation10 + $0x20] sm:$0xff]   ;;  %v1804_v63 = vld [vmem:[#allocation10 + $0x28] sm:$0xff]   ;;  %v1809_v1 = vld [vmem:[#allocation10 + $0x30] sm:$0xff]  }
  0x53   :  { %1385 = vmatprep.subr.bf16.mxu1 %v1486_v16  ;;  %v130_v46 = vunpack.c.0.s8 %v117_v42  ;;  %v145_v47 = vcvt.s32.f32 %v129_v40  ;;  %v131_v48 = vunpack.c.1.s8 %v117_v42  ;;  %v132_v51 = vunpack.c.2.s8 %v117_v42  ;;  %v1498_v4 = vld [vmem:[#allocation7] sm:$0xff]   ;;  %v1499_v5 = vld [vmem:[#allocation7 + $0x8] sm:$0xff]   ;;  %v1500_v6 = vld [vmem:[#allocation7 + $0x10] sm:$0xff]  }
  0x54   :  { %1354 = vmatpush3.bf16.msra.mxu0 %v1476_v2  ;;  %390 = vadd.xlane.f32.xlu0 %v135_v17  ;;  %v133_v53 = vunpack.c.3.s8 %v117_v42  ;;  %v153_v55 = vunpack.c.h.s8.bf16 %v1768_v13  ;;  %v154_v56 = vunpack.c.l.s8.bf16 %v1774_v28  ;;  %v155_v61 = vunpack.c.h.s8.bf16 %v1774_v28  ;;  %v1496_v2 = vld [vmem:[#allocation9 + $0x38] sm:$0xff]  }
  0x55   :  { %1355 = vmatprep.subr.bf16.mxu0 %v1477_v3  ;;  %394 = vadd.xlane.f32.xlu1 %v137_v20  ;;  %v146_v50 = vcvt.s32.f32 %v130_v46  ;;  %v147_v52 = vcvt.s32.f32 %v131_v48  ;;  %v148_v57 = vcvt.s32.f32 %v132_v51  ;;  %v156_v62 = vunpack.c.l.s8.bf16 %v117_v42 }
  0x56   :  { %1386 = vmatpush3.bf16.msra.mxu1 %v1486_v16  ;;  %v149_v58 = vcvt.s32.f32 %v133_v53  ;;  %v157_v0 = vunpack.c.h.s8.bf16 %v117_v42  ;;  %v1664_v8 = vmov 0.0  }
  0x57   :  { %1387 = vmatprep.subr.bf16.mxu1 %v1488_v22  ;;  %98 = vst.msk [vmem:[#allocation3] sm:$0xff] %vm97_vm0, %v1664_v8  ;;  %99 = vst.msk [vmem:[#allocation3 + $0x8] sm:$0xff] %vm97_vm0, %v1664_v8 }
  0x58   :  { %1356 = vmatpush3.bf16.msra.mxu0 %v1477_v3  ;;  %396 = vadd.xlane.f32.xlu0 %v138_v23  ;;  %v1813_v3 = vld [vmem:[#allocation10 + $0x38] sm:$0xff]   ;;  %100 = vst.msk [vmem:[#allocation3 + $0x10] sm:$0xff] %vm97_vm0, %v1664_v8  ;;  %101 = vst.msk [vmem:[#allocation3 + $0x18] sm:$0xff] %vm97_vm0, %v1664_v8 }
  0x59   :  { %1357 = vmatprep.subr.bf16.mxu0 %v1478_v7  ;;  %398 = vadd.xlane.f32.xlu1 %v139_v26  ;;  %102 = vst.msk [vmem:[#allocation3 + $0x20] sm:$0xff] %vm97_vm0, %v1664_v8  ;;  %103 = vst.msk [vmem:[#allocation3 + $0x28] sm:$0xff] %vm97_vm0, %v1664_v8  ;;  %v1665_v26 = vmov 0  }
  0x5a   :  { %1388 = vmatpush3.bf16.msra.mxu1 %v1488_v22  ;;  %104 = vst.msk [vmem:[#allocation3 + $0x30] sm:$0xff] %vm97_vm0, %v1664_v8  ;;  %105 = vst.msk [vmem:[#allocation3 + $0x38] sm:$0xff] %vm97_vm0, %v1664_v8  ;;  %1473 = vset.pattern.permute.xlu1 %v1665_v26 }
  0x5b   :  { %1389 = vmatprep.subr.bf16.mxu1 %v1490_v30  ;;  %106 = vst.msk [vmem:[#allocation3 + $0x40] sm:$0xff] %vm97_vm0, %v1664_v8  ;;  %107 = vst.msk [vmem:[#allocation3 + $0x48] sm:$0xff] %vm97_vm0, %v1664_v8  ;;  %1472 = vset.pattern.permute.xlu0 %v1665_v26 }
  0x5c   :  { %1358 = vmatpush3.bf16.msra.mxu0 %v1478_v7  ;;  %400 = vadd.xlane.f32.xlu0 %v140_v31  ;;  %v1501_v7 = vld [vmem:[#allocation7 + $0x18] sm:$0xff]   ;;  %108 = vst.msk [vmem:[#allocation3 + $0x50] sm:$0xff] %vm97_vm0, %v1664_v8  ;;  %109 = vst.msk [vmem:[#allocation3 + $0x58] sm:$0xff] %vm97_vm0, %v1664_v8 }
  0x5d   :  { %1359 = vmatprep.subr.bf16.mxu0 %v1479_v19  ;;  %402 = vadd.xlane.f32.xlu1 %v141_v33  ;;  %110 = vst.msk [vmem:[#allocation3 + $0x60] sm:$0xff] %vm97_vm0, %v1664_v8  ;;  %111 = vst.msk [vmem:[#allocation3 + $0x68] sm:$0xff] %vm97_vm0, %v1664_v8 }
  0x5e   :  { %1390 = vmatpush3.bf16.msra.mxu1 %v1490_v30  ;;  %112 = vst.msk [vmem:[#allocation3 + $0x70] sm:$0xff] %vm97_vm0, %v1664_v8  ;;  %113 = vst.msk [vmem:[#allocation3 + $0x78] sm:$0xff] %vm97_vm0, %v1664_v8  ;;  %v372_v9 = vld [vmem:[#allocation3] sm:$0xff]  ;;  %v373_v14 = vld [vmem:[#allocation3 + $0x8] sm:$0xff] }
  0x5f   :  { %1391 = vmatprep.subr.bf16.mxu1 %v1492_v35  ;;  %v374_v10 = vld [vmem:[#allocation3 + $0x10] sm:$0xff]  ;;  %v375_v16 = vld [vmem:[#allocation3 + $0x18] sm:$0xff] }
  0x60   :  { %1360 = vmatpush3.bf16.msra.mxu0 %v1479_v19  ;;  %404 = vadd.xlane.f32.xlu0 %v142_v37  ;;  %v376_v21 = vld [vmem:[#allocation3 + $0x20] sm:$0xff]  ;;  %v377_v22 = vld [vmem:[#allocation3 + $0x28] sm:$0xff] }
  0x61   :  { %1361 = vmatprep.subr.bf16.mxu0 %v1480_v25  ;;  %406 = vadd.xlane.f32.xlu1 %v143_v39  ;;  %v378_v28 = vld [vmem:[#allocation3 + $0x30] sm:$0xff] }
  0x62   :  { %1392 = vmatpush3.bf16.msra.mxu1 %v1492_v35  ;;  %v380_v39 = vld [vmem:[#allocation3 + $0x40] sm:$0xff]  ;;  %v381_v42 = vld [vmem:[#allocation3 + $0x48] sm:$0xff] }
  0x63   :  { %1393 = vmatprep.subr.bf16.mxu1 %v1494_v43  ;;  %v383_v51 = vld [vmem:[#allocation3 + $0x58] sm:$0xff] }
  0x64   :  { %1362 = vmatpush3.bf16.msra.mxu0 %v1480_v25  ;;  %408 = vadd.xlane.f32.xlu0 %v144_v45 }
  0x65   :  { %1363 = vmatprep.subr.bf16.mxu0 %v1481_v29  ;;  %410 = vadd.xlane.f32.xlu1 %v145_v47  ;;  %v382_v47 = vld [vmem:[#allocation3 + $0x50] sm:$0xff] }
  0x66   :  { %1394 = vmatpush3.bf16.msra.mxu1 %v1494_v43 }
  0x67   :  { %1395 = vmatprep.subr.bf16.mxu1 %v1496_v2 }
  0x68   :  { %1364 = vmatpush3.bf16.msra.mxu0 %v1481_v29  ;;  %412 = vadd.xlane.f32.xlu0 %v146_v50  ;;  %v379_v29 = vld [vmem:[#allocation3 + $0x38] sm:$0xff] }
  0x69   :  { %1413 = vmatprep.subr.bf16.mxu0 %v1778_v36  ;;  %414 = vadd.xlane.f32.xlu1 %v147_v52 }
  0x6a   :  { %1396 = vmatpush3.bf16.msra.mxu1 %v1496_v2 }
  0x6b   :  { %1366 = vmatmul.mubr.bf16.vlgmr.msra.gmra.mrb[0].mxu0 %v151_v41  ;;  %1445 = vmatprep.subr.bf16.mxu1 %v1778_v36 }
  0x6c   :  { %1369 = vmatprep.mubr.bf16.mxu0 %v152_v44  ;;  %1414 = vmatpush3.bf16.msra.mxu0 %v1778_v36 }
  0x6d   :  { %1415 = vmatprep.subr.bf16.mxu0 %v1785_v49  ;;  %416 = vadd.xlane.f32.xlu0 %v148_v57  ;;  %v384_v57 = vld [vmem:[#allocation3 + $0x60] sm:$0xff] }
  0x6e   :  { %418 = vadd.xlane.f32.xlu1 %v149_v58 }
  0x70   :  { %1416 = vmatpush3.bf16.msra.mxu0 %v1785_v49 }
  0x71   :  { %1417 = vmatprep.subr.bf16.mxu0 %v1789_v54 }
  0x73   :  { %1370 = vmatmul.mubr.bf16.gmra.mrb[4].mxu0 %v153_v55 }
  0x74   :  { %1373 = vmatprep.mubr.bf16.mxu0 %v154_v56  ;;  %1418 = vmatpush3.bf16.msra.mxu0 %v1789_v54 }
  0x75   :  { %1419 = vmatprep.subr.bf16.mxu0 %v1795_v59 }
  0x78   :  { %1420 = vmatpush3.bf16.msra.mxu0 %v1795_v59 }
  0x79   :  { %1421 = vmatprep.subr.bf16.mxu0 %v1799_v60 }
  0x7b   :  { %1374 = vmatmul.mubr.bf16.gmra.mrb[8].mxu0 %v155_v61 }
  0x7c   :  { %1377 = vmatprep.mubr.bf16.mxu0 %v156_v62  ;;  %1422 = vmatpush3.bf16.msra.mxu0 %v1799_v60  ;;  %v385_v62 = vld [vmem:[#allocation3 + $0x68] sm:$0xff] }
  0x7d   :  { %1423 = vmatprep.subr.bf16.mxu0 %v1804_v63 }
  0x80   :  { %1424 = vmatpush3.bf16.msra.mxu0 %v1804_v63 }
  0x81   :  { %1425 = vmatprep.subr.bf16.mxu0 %v1809_v1 }
  0x83   :  { %1378 = vmatmul.mubr.bf16.gmra.mrb[12].mxu0 %v157_v0 }
  0x84   :  { %1426 = vmatpush3.bf16.msra.mxu0 %v1809_v1  ;;  %1429 = vmatprep.mubr.bf16.mxu0 %v1498_v4 }
  0x85   :  { %1427 = vmatprep.subr.bf16.mxu0 %v1813_v3 }
  0x88   :  { %1428 = vmatpush3.bf16.msra.mxu0 %v1813_v3 }
  0x8b   :  { %1430 = vmatmul.mubr.bf16.vlgmr.msra.gmra.mrb[16].mxu0 %v1499_v5 }
  0x8c   :  { %1433 = vmatprep.mubr.bf16.mxu0 %v1500_v6 }
  0x93   :  { %1434 = vmatmul.mubr.bf16.gmra.mrb[20].mxu0 %v1501_v7  ;;  %v386_v7 = vld [vmem:[#allocation3 + $0x70] sm:$0xff] }
  0xdd   :  { %v389_v11 = vpop.xlane.xlu0 %388 }
  0xde   :  { %v420_v12 = vadd.f32 %v389_v11, %v372_v9  ;;  %v393_v13 = vpop.xlane.xlu1 %392  ;;  %v387_v11 = vld [vmem:[#allocation3 + $0x78] sm:$0xff] }
  0xdf   :  { %v422_v15 = vadd.f32 %v393_v13, %v374_v10 }
  0xe0   :  { %437 = vst.msk [vmem:[#allocation3] sm:$0xff] %vm97_vm0, %v420_v12 }
  0xe1   :  { %v391_v17 = vpop.xlane.xlu0 %390  ;;  %439 = vst.msk [vmem:[#allocation3 + $0x10] sm:$0xff] %vm97_vm0, %v422_v15 }
  0xe2   :  { %v421_v18 = vadd.f32 %v391_v17, %v373_v14  ;;  %v395_v19 = vpop.xlane.xlu1 %394 }
  0xe3   :  { %v423_v20 = vadd.f32 %v395_v19, %v375_v16 }
  0xe4   :  { %438 = vst.msk [vmem:[#allocation3 + $0x8] sm:$0xff] %vm97_vm0, %v421_v18 }
  0xe5   :  { %440 = vst.msk [vmem:[#allocation3 + $0x18] sm:$0xff] %vm97_vm0, %v423_v20  ;;  %v397_v23 = vpop.xlane.xlu0 %396 }
  0xe6   :  { %v424_v24 = vadd.f32 %v397_v23, %v376_v21  ;;  %v399_v25 = vpop.xlane.xlu1 %398 }
  0xe7   :  { %v425_v27 = vadd.f32 %v399_v25, %v377_v22  ;;  %v456_v30 = vld [vmem:[#allocation3] sm:$0xff] }
  0xe8   :  { %441 = vst.msk [vmem:[#allocation3 + $0x20] sm:$0xff] %vm97_vm0, %v424_v24  ;;  %v458_v32 = vld [vmem:[#allocation3 + $0x10] sm:$0xff]  ;;  %v472_v33 = vmax.f32 %v456_v30, 1.0 }
  0xe9   :  { %442 = vst.msk [vmem:[#allocation3 + $0x28] sm:$0xff] %vm97_vm0, %v425_v27  ;;  %v401_v31 = vpop.xlane.xlu0 %400  ;;  %v474_v41 = vmax.f32 %v458_v32, 1.0 }
  0xea   :  { %v426_v34 = vadd.f32 %v401_v31, %v378_v28  ;;  %v403_v35 = vpop.xlane.xlu1 %402  ;;  %1506 = vrcp.f32 %v472_v33 }
  0xeb   :  { %v427_v37 = vadd.f32 %v403_v35, %v379_v29  ;;  %v457_v38 = vld [vmem:[#allocation3 + $0x8] sm:$0xff] }
  0xec   :  { %443 = vst.msk [vmem:[#allocation3 + $0x30] sm:$0xff] %vm97_vm0, %v426_v34  ;;  %v473_v40 = vmax.f32 %v457_v38, 1.0  ;;  %v459_v44 = vld [vmem:[#allocation3 + $0x18] sm:$0xff] }
  0xed   :  { %444 = vst.msk [vmem:[#allocation3 + $0x38] sm:$0xff] %vm97_vm0, %v427_v37  ;;  %v405_v43 = vpop.xlane.xlu0 %404  ;;  %v475_v50 = vmax.f32 %v459_v44, 1.0 }
  0xee   :  { %1508 = vrcp.f32 %v473_v40  ;;  %v428_v45 = vadd.f32 %v405_v43, %v380_v39  ;;  %v407_v46 = vpop.xlane.xlu1 %406 }
  0xef   :  { %v429_v48 = vadd.f32 %v407_v46, %v381_v42  ;;  %1510 = vrcp.f32 %v474_v41  ;;  %v460_v53 = vld [vmem:[#allocation3 + $0x20] sm:$0xff] }
  0xf0   :  { %445 = vst.msk [vmem:[#allocation3 + $0x40] sm:$0xff] %vm97_vm0, %v428_v45  ;;  %1512 = vrcp.f32 %v475_v50  ;;  %v476_v61 = vmax.f32 %v460_v53, 1.0  ;;  %v461_v2 = vld [vmem:[#allocation3 + $0x28] sm:$0xff] }
  0xf1   :  { %v409_v52 = vpop.xlane.xlu0 %408  ;;  %446 = vst.msk [vmem:[#allocation3 + $0x48] sm:$0xff] %vm97_vm0, %v429_v48  ;;  %v477_v10 = vmax.f32 %v461_v2, 1.0 }
  0xf2   :  { %v430_v55 = vadd.f32 %v409_v52, %v382_v47  ;;  %v411_v56 = vpop.xlane.xlu1 %410  ;;  %1514 = vrcp.f32 %v476_v61 }
  0xf3   :  { %v431_v58 = vadd.f32 %v411_v56, %v383_v51  ;;  %v462_v14 = vld [vmem:[#allocation3 + $0x30] sm:$0xff] }
  0xf4   :  { %447 = vst.msk [vmem:[#allocation3 + $0x50] sm:$0xff] %vm97_vm0, %v430_v55  ;;  %v1507_v4 = vpop.eup %1506  ;;  %v478_v20 = vmax.f32 %v462_v14, 1.0  ;;  %v463_v22 = vld [vmem:[#allocation3 + $0x38] sm:$0xff] }
  0xf5   :  { %v413_v0 = vpop.xlane.xlu0 %412  ;;  %448 = vst.msk [vmem:[#allocation3 + $0x58] sm:$0xff] %vm97_vm0, %v431_v58  ;;  %728 = vperm.xlu0 %1472, %v1507_v4   ;;  %v479_v25 = vmax.f32 %v463_v22, 1.0 }
  0xf6   :  { %v432_v5 = vadd.f32 %v413_v0, %v384_v57  ;;  %v415_v6 = vpop.xlane.xlu1 %414 }
  0xf7   :  { %v433_v8 = vadd.f32 %v415_v6, %v385_v62  ;;  %v464_v27 = vld [vmem:[#allocation3 + $0x40] sm:$0xff] }
  0xf8   :  { %v1509_v9 = vpop.eup %1508  ;;  %449 = vst.msk [vmem:[#allocation3 + $0x60] sm:$0xff] %vm97_vm0, %v432_v5  ;;  %v465_v12 = vld [vmem:[#allocation3 + $0x48] sm:$0xff]  ;;  %v480_v30 = vmax.f32 %v464_v27, 1.0 }
  0xf9   :  { %733 = vperm.xlu1 %1473, %v1509_v9   ;;  %450 = vst.msk [vmem:[#allocation3 + $0x68] sm:$0xff] %vm97_vm0, %v433_v8  ;;  %v481_v15 = vmax.f32 %v465_v12, 1.0  ;;  %v1511_v16 = vpop.eup %1510 }
  0xfa   :  { %v417_v13 = vpop.xlane.xlu0 %416  ;;  %v1513_v24 = vpop.eup %1512 }
  0xfb   :  { %v434_v17 = vadd.f32 %v417_v13, %v386_v7  ;;  %v419_v18 = vpop.xlane.xlu1 %418  ;;  %1516 = vrcp.f32 %v481_v15  ;;  %v466_v33 = vld [vmem:[#allocation3 + $0x50] sm:$0xff]  ;;  %v1502_v15 = vld [vmem:[#allocation7 + $0x20] sm:$0xff]  }
  0xfc   :  { %v435_v19 = vadd.f32 %v419_v18, %v387_v11  ;;  %1518 = vrcp.f32 %v477_v10  ;;  %v467_v21 = vld [vmem:[#allocation3 + $0x58] sm:$0xff]  ;;  %v1515_v29 = vpop.eup %1514  ;;  %v482_v37 = vmax.f32 %v466_v33, 1.0  ;;  %v1868_v33 = vld [vmem:[%s1905_s4] ss:$0 sm:$0xff]  ;;  %s1666_s4 = smov [#allocation12]  }
  0xfd   :  { %451 = vst.msk [vmem:[#allocation3 + $0x70] sm:$0xff] %vm97_vm0, %v434_v17  ;;  %738 = vperm.xlu1 %1473, %v1511_v16   ;;  %v483_v23 = vmax.f32 %v467_v21, 1.0  ;;  %v1505_v16 = vld [vmem:[#allocation7 + $0x38] sm:$0xff]   ;;  %s1171_s19 = sshll.u32 %s1666_s4, 4  ;;  %s1172_s19 = int_to_ptr.vmem [resolvable:$true] %s1171_s19 }
  0xfe   :  { %452 = vst.msk [vmem:[#allocation3 + $0x78] sm:$0xff] %vm97_vm0, %v435_v19  ;;  %s1626_s20 = scalar_lea.vmem %s1172_s19, 1024  ;;  %p1631_p5 = scmp.lt.s32.totalorder %s1172_s19, %s1172_s19 }
  0xff   :  { %1520 = vrcp.f32 %v483_v23  ;;  %v468_v39 = vld [vmem:[#allocation3 + $0x60] sm:$0xff]  ;;  %p1627_p4 = scmp.ne.s32.totalorder %s1172_s19, %s1626_s20  ;;  %p1632_p6 = scmp.lt.s32.totalorder %s1626_s20, %s1626_s20 }
 0x100   :  { %1522 = vrcp.f32 %v478_v20  ;;  %v469_v26 = vld [vmem:[#allocation3 + $0x68] sm:$0xff]  ;;  %v484_v41 = vmax.f32 %v468_v39, 1.0 }
 0x101   :  { %743 = vperm.xlu1 %1473, %v1513_v24   ;;  %v485_v28 = vmax.f32 %v469_v26, 1.0  ;;  %p1633_p7 = por %p1632_p6, %p1631_p5 }
 0x103   :  { %1524 = vrcp.f32 %v485_v28  ;;  %p1634_p8 = pnand %p1633_p7, %p1627_p4 }
 0x104   :  { %1526 = vrcp.f32 %v479_v25  ;;  %v470_v43 = vld [vmem:[#allocation3 + $0x70] sm:$0xff] }
 0x105   :  { %v471_v31 = vld [vmem:[#allocation3 + $0x78] sm:$0xff]  ;;  %v1517_v32 = vpop.eup %1516  ;;  %748 = vperm.xlu1 %1473, %v1515_v29   ;;  %v486_v45 = vmax.f32 %v470_v43, 1.0 }
 0x106   :  { %v487_v34 = vmax.f32 %v471_v31, 1.0  ;;  %v1519_v35 = vpop.eup %1518  ;;  %773 = vperm.xlu0 %1472, %v1517_v32  }
 0x108   :  { %1528 = vrcp.f32 %v487_v34 }
 0x109   :  { %1530 = vrcp.f32 %v480_v30  ;;  %v1521_v38 = vpop.eup %1520  ;;  %753 = vperm.xlu1 %1473, %v1519_v35  }
 0x10a   :  { %v1523_v40 = vpop.eup %1522  ;;  %783 = vperm.xlu0 %1472, %v1521_v38   ;;  %1532 = vrcp.f32 %v482_v37 }
 0x10b   :  { %1534 = vrcp.f32 %v484_v41 }
 0x10c   :  { %1536 = vrcp.f32 %v486_v45 }
 0x10d   :  { %v1525_v42 = vpop.eup %1524  ;;  %758 = vperm.xlu1 %1473, %v1523_v40  }
 0x10e   :  { %v1527_v44 = vpop.eup %1526  ;;  %793 = vperm.xlu0 %1472, %v1525_v42  }
 0x111   :  { %763 = vperm.xlu1 %1473, %v1527_v44  }
 0x112   :  { %v1529_v46 = vpop.eup %1528 }
 0x113   :  { %v1531_v47 = vpop.eup %1530  ;;  %803 = vperm.xlu0 %1472, %v1529_v46  }
 0x114   :  { %v1533_v48 = vpop.eup %1532 }
 0x115   :  { %768 = vperm.xlu1 %1473, %v1531_v47   ;;  %v1535_v50 = vpop.eup %1534 }
 0x116   :  { %v1537_v51 = vpop.eup %1536 }
 0x119   :  { %778 = vperm.xlu1 %1473, %v1533_v48  }
 0x11d   :  { %788 = vperm.xlu1 %1473, %v1535_v50  }
 0x121   :  { %798 = vperm.xlu1 %1473, %v1537_v51  }
 0x13e   :  { %v1367_v52 = vpop.f32.mrb[0].mxu0 }
 0x13f   :  { %v277_v53 = vpop.f32.mrb[1].mxu0 }
 0x140   :  { %v1368_v55 = vpop.f32.mrb[2].mxu0 }
 0x141   :  { %v537_v56 = vpack.c.bf16 %v1368_v55, %v1367_v52  ;;  %v280_v57 = vpop.f32.mrb[3].mxu0 }
 0x142   :  { %v536_v58 = vpack.c.bf16 %v280_v57, %v277_v53 }
 0x144   :  { %1397 = vmatprep.mubr.bf16.mxu1 %v536_v58 }
 0x145   :  { %1398 = vmatmul.mubr.bf16.vlgmr.msra.gmra.mrb[0].mxu1 %v537_v56 }
 0x146   :  { %1453 = vmatpush3.bf16.msra.mxu1 %v1778_v36  ;;  %v1371_v61 = vpop.f32.mrb[4].mxu0 }
 0x147   :  { %v293_v62 = vpop.f32.mrb[5].mxu0  ;;  %1446 = vmatprep.subr.bf16.mxu1 %v1785_v49 }
 0x148   :  { %v1372_v0 = vpop.f32.mrb[6].mxu0 }
 0x149   :  { %v539_v2 = vpack.c.bf16 %v1372_v0, %v1371_v61  ;;  %v296_v4 = vpop.f32.mrb[7].mxu0 }
 0x14a   :  { %v538_v5 = vpack.c.bf16 %v296_v4, %v293_v62  ;;  %1454 = vmatpush3.bf16.msra.mxu1 %v1785_v49 }
 0x14b   :  { %1447 = vmatprep.subr.bf16.mxu1 %v1789_v54 }
 0x14c   :  { %1401 = vmatprep.mubr.bf16.mxu1 %v538_v5 }
 0x14d   :  { %1402 = vmatmul.mubr.bf16.gmra.mrb[4].mxu1 %v539_v2 }
 0x14e   :  { %1455 = vmatpush3.bf16.msra.mxu1 %v1789_v54  ;;  %v1375_v6 = vpop.f32.mrb[8].mxu0 }
 0x14f   :  { %v309_v7 = vpop.f32.mrb[9].mxu0  ;;  %1448 = vmatprep.subr.bf16.mxu1 %v1795_v59 }
 0x150   :  { %v1376_v36 = vpop.f32.mrb[10].mxu0 }
 0x151   :  { %v541_v8 = vpack.c.bf16 %v1376_v36, %v1375_v6  ;;  %v312_v9 = vpop.f32.mrb[11].mxu0 }
 0x152   :  { %v540_v10 = vpack.c.bf16 %v312_v9, %v309_v7  ;;  %1456 = vmatpush3.bf16.msra.mxu1 %v1795_v59  ;;  %v1503_v59 = vld [vmem:[#allocation7 + $0x28] sm:$0xff]  }
 0x153   :  { %1449 = vmatprep.subr.bf16.mxu1 %v1799_v60 }
 0x154   :  { %1405 = vmatprep.mubr.bf16.mxu1 %v540_v10 }
 0x155   :  { %1406 = vmatmul.mubr.bf16.gmra.mrb[8].mxu1 %v541_v8 }
 0x156   :  { %1457 = vmatpush3.bf16.msra.mxu1 %v1799_v60  ;;  %v1379_v49 = vpop.f32.mrb[12].mxu0  ;;  %v1504_v60 = vld [vmem:[#allocation7 + $0x30] sm:$0xff]  }
 0x157   :  { %v325_v11 = vpop.f32.mrb[13].mxu0  ;;  %1450 = vmatprep.subr.bf16.mxu1 %v1804_v63 }
 0x158   :  { %v1380_v54 = vpop.f32.mrb[14].mxu0 }
 0x159   :  { %v543_v12 = vpack.c.bf16 %v1380_v54, %v1379_v49  ;;  %v328_v13 = vpop.f32.mrb[15].mxu0 }
 0x15a   :  { %v542_v14 = vpack.c.bf16 %v328_v13, %v325_v11  ;;  %1458 = vmatpush3.bf16.msra.mxu1 %v1804_v63 }
 0x15b   :  { %1451 = vmatprep.subr.bf16.mxu1 %v1809_v1 }
 0x15c   :  { %1409 = vmatprep.mubr.bf16.mxu1 %v542_v14 }
 0x15d   :  { %1410 = vmatmul.mubr.bf16.gmra.mrb[12].mxu1 %v543_v12 }
 0x15e   :  { %1459 = vmatpush3.bf16.msra.mxu1 %v1809_v1  ;;  %1437 = vmatprep.mubr.bf16.mxu1 %v1502_v15  ;;  %v1431_v17 = vpop.f32.mrb[16].mxu0 }
 0x15f   :  { %1452 = vmatprep.subr.bf16.mxu1 %v1813_v3  ;;  %v968_v63 = vpop.f32.mrb[17].mxu0 }
 0x160   :  { %v1432_v18 = vpop.f32.mrb[18].mxu0 }
 0x161   :  { %v971_v19 = vpop.f32.mrb[19].mxu0 }
 0x162   :  { %1460 = vmatpush3.bf16.msra.mxu1 %v1813_v3 }
 0x165   :  { %1438 = vmatmul.mubr.bf16.vlgmr.msra.gmra.mrb[16].mxu1 %v1503_v59 }
 0x166   :  { %1441 = vmatprep.mubr.bf16.mxu1 %v1504_v60  ;;  %v1435_v20 = vpop.f32.mrb[20].mxu0 }
 0x167   :  { %v984_v21 = vpop.f32.mrb[21].mxu0 }
 0x168   :  { %v1436_v22 = vpop.f32.mrb[22].mxu0 }
 0x169   :  { %v987_v23 = vpop.f32.mrb[23].mxu0 }
 0x16d   :  { %1442 = vmatmul.mubr.bf16.gmra.mrb[20].mxu1 %v1505_v16 }
 0x174   :  { %v729_v3 = vpop.permute.xlu0 %728 }
 0x178   :  { %v734_v1 = vpop.permute.xlu1 %733 }
 0x17c   :  { %v739_v24 = vpop.permute.xlu1 %738 }
 0x180   :  { %v744_v25 = vpop.permute.xlu1 %743 }
 0x184   :  { %v749_v26 = vpop.permute.xlu1 %748 }
 0x188   :  { %v754_v27 = vpop.permute.xlu1 %753 }
 0x18c   :  { %v759_v38 = vpop.permute.xlu1 %758 }
 0x190   :  { %v764_v53 = vpop.permute.xlu1 %763 }
 0x194   :  { %v769_v60 = vpop.permute.xlu1 %768 }
 0x218   :  { %v1399_v28 = vpop.f32.mrb[0].mxu1 }
 0x219   :  { %v808_v29 = vmul.f32 %v1399_v28, %v739_v24  ;;  %v663_v30 = vpop.f32.mrb[1].mxu1 }
 0x21a   :  { %v806_v31 = vmul.f32 %v729_v3, %v663_v30  ;;  %v1400_v32 = vpop.f32.mrb[2].mxu1 }
 0x21b   :  { %v809_v34 = vmul.f32 %v1400_v32, %v744_v25  ;;  %v1033_v35 = vadd.f32 %v1431_v17, %v808_v29  ;;  %v666_v37 = vpop.f32.mrb[3].mxu1 }
 0x21c   :  { %v807_v39 = vmul.f32 %v734_v1, %v666_v37  ;;  %v1031_v40 = vadd.f32 %v968_v63, %v806_v31 }
 0x21d   :  { %v1056_v41 = vadd.f32 %v1868_v33, %v1033_v35  ;;  %v1034_v42 = vadd.f32 %v1432_v18, %v809_v34  ;;  %v774_v18 = vpop.permute.xlu0 %773 }
 0x21e   :  { %v1054_v43 = vadd.f32 %v1868_v33, %v1031_v40  ;;  %v1032_v44 = vadd.f32 %v971_v19, %v807_v39 }
 0x21f   :  { %v1057_v45 = vadd.f32 %v1868_v33, %v1034_v42  ;;  %v1072_v48 = vmax.f32 %v1056_v41, 0.0 }
 0x220   :  { %v1055_v46 = vadd.f32 %v1868_v33, %v1032_v44  ;;  %v1403_v47 = vpop.f32.mrb[4].mxu1  ;;  %v1070_v55 = vmax.f32 %v1054_v43, 0.0 }
 0x221   :  { %v1073_v50 = vmax.f32 %v1057_v45, 0.0  ;;  %v812_v51 = vmul.f32 %v1403_v47, %v759_v38  ;;  %v679_v52 = vpop.f32.mrb[5].mxu1 }
 0x222   :  { %v1071_v56 = vmax.f32 %v1055_v46, 0.0  ;;  %v810_v57 = vmul.f32 %v749_v26, %v679_v52  ;;  %v1404_v58 = vpop.f32.mrb[6].mxu1 }
 0x223   :  { %v1262_v61 = vpack.c.bf16 %v1073_v50, %v1072_v48  ;;  %v813_v62 = vmul.f32 %v1404_v58, %v764_v53  ;;  %v1037_v0 = vadd.f32 %v1435_v20, %v812_v51  ;;  %v682_v2 = vpop.f32.mrb[7].mxu1  ;;  %v779_v20 = vpop.permute.xlu1 %778 }
 0x224   :  { %v1257_v4 = vpack.c.bf16 %v1071_v56, %v1070_v55  ;;  %v811_v5 = vmul.f32 %v754_v27, %v682_v2  ;;  %v1035_v6 = vadd.f32 %v984_v21, %v810_v57 }
 0x225   :  { %1294 = vst [vmem:[#allocation12 + $0x8] sm:$0xff] %v1262_v61   ;;  %v1060_v7 = vadd.f32 %v1868_v33, %v1037_v0  ;;  %v1038_v36 = vadd.f32 %v1436_v22, %v813_v62  ;;  %v784_v22 = vpop.permute.xlu0 %783 }
 0x226   :  { %1258 = vst [vmem:[#allocation12] sm:$0xff] %v1257_v4   ;;  %v1058_v8 = vadd.f32 %v1868_v33, %v1035_v6  ;;  %v1036_v9 = vadd.f32 %v987_v23, %v811_v5 }
 0x227   :  { %v1061_v10 = vadd.f32 %v1868_v33, %v1038_v36  ;;  %v1076_v54 = vmax.f32 %v1060_v7, 0.0  ;;  %v789_v24 = vpop.permute.xlu1 %788 }
 0x228   :  { %v1059_v49 = vadd.f32 %v1868_v33, %v1036_v9  ;;  %v1407_v11 = vpop.f32.mrb[8].mxu1  ;;  %v1074_v14 = vmax.f32 %v1058_v8, 0.0 }
 0x229   :  { %v1077_v12 = vmax.f32 %v1061_v10, 0.0  ;;  %v695_v13 = vpop.f32.mrb[9].mxu1  ;;  %v816_v25 = vmul.f32 %v1407_v11, %v779_v20  ;;  %v794_v27 = vpop.permute.xlu0 %793 }
 0x22a   :  { %v1075_v15 = vmax.f32 %v1059_v49, 0.0  ;;  %v1408_v59 = vpop.f32.mrb[10].mxu1  ;;  %v814_v26 = vmul.f32 %v769_v60, %v695_v13 }
 0x22b   :  { %v1272_v16 = vpack.c.bf16 %v1077_v12, %v1076_v54  ;;  %v698_v17 = vpop.f32.mrb[11].mxu1  ;;  %v817_v3 = vmul.f32 %v1408_v59, %v784_v22  ;;  %v799_v42 = vpop.permute.xlu1 %798 }
 0x22c   :  { %v1267_v63 = vpack.c.bf16 %v1075_v15, %v1074_v14  ;;  %v815_v31 = vmul.f32 %v774_v18, %v698_v17 }
 0x22d   :  { %1296 = vst [vmem:[#allocation12 + $0x18] sm:$0xff] %v1272_v16   ;;  %v804_v43 = vpop.permute.xlu0 %803 }
 0x22e   :  { %1295 = vst [vmem:[#allocation12 + $0x10] sm:$0xff] %v1267_v63  }
 0x230   :  { %v1411_v19 = vpop.f32.mrb[12].mxu1 }
 0x231   :  { %v711_v21 = vpop.f32.mrb[13].mxu1  ;;  %v820_v45 = vmul.f32 %v1411_v19, %v799_v42 }
 0x232   :  { %v1412_v23 = vpop.f32.mrb[14].mxu1  ;;  %v818_v48 = vmul.f32 %v789_v24, %v711_v21 }
 0x233   :  { %v714_v1 = vpop.f32.mrb[15].mxu1  ;;  %v821_v53 = vmul.f32 %v1412_v23, %v804_v43 }
 0x234   :  { %v819_v58 = vmul.f32 %v794_v27, %v714_v1 }
 0x238   :  { %v1439_v28 = vpop.f32.mrb[16].mxu1 }
 0x239   :  { %v1041_v29 = vadd.f32 %v1439_v28, %v816_v25  ;;  %v1000_v30 = vpop.f32.mrb[17].mxu1 }
 0x23a   :  { %v1039_v32 = vadd.f32 %v1000_v30, %v814_v26  ;;  %v1440_v34 = vpop.f32.mrb[18].mxu1 }
 0x23b   :  { %v1064_v35 = vadd.f32 %v1868_v33, %v1041_v29  ;;  %v1042_v37 = vadd.f32 %v1440_v34, %v817_v3  ;;  %v1003_v38 = vpop.f32.mrb[19].mxu1 }
 0x23c   :  { %v1062_v39 = vadd.f32 %v1868_v33, %v1039_v32  ;;  %v1040_v40 = vadd.f32 %v1003_v38, %v815_v31 }
 0x23d   :  { %v1065_v41 = vadd.f32 %v1868_v33, %v1042_v37  ;;  %v1080_v46 = vmax.f32 %v1064_v35, 0.0 }
 0x23e   :  { %v1063_v44 = vadd.f32 %v1868_v33, %v1040_v40  ;;  %v1078_v50 = vmax.f32 %v1062_v39, 0.0 }
 0x23f   :  { %v1081_v47 = vmax.f32 %v1065_v41, 0.0 }
 0x240   :  { %v1079_v51 = vmax.f32 %v1063_v44, 0.0  ;;  %v1443_v52 = vpop.f32.mrb[20].mxu1 }
 0x241   :  { %v1282_v55 = vpack.c.bf16 %v1081_v47, %v1080_v46  ;;  %v1045_v56 = vadd.f32 %v1443_v52, %v820_v45  ;;  %v1016_v57 = vpop.f32.mrb[21].mxu1 }
 0x242   :  { %v1277_v61 = vpack.c.bf16 %v1079_v51, %v1078_v50  ;;  %v1043_v62 = vadd.f32 %v1016_v57, %v818_v48  ;;  %v1444_v0 = vpop.f32.mrb[22].mxu1 }
 0x243   :  { %1298 = vst [vmem:[#allocation12 + $0x28] sm:$0xff] %v1282_v55   ;;  %v1068_v2 = vadd.f32 %v1868_v33, %v1045_v56  ;;  %v1046_v4 = vadd.f32 %v1444_v0, %v821_v53  ;;  %v1019_v5 = vpop.f32.mrb[23].mxu1 }
 0x244   :  { %1297 = vst [vmem:[#allocation12 + $0x20] sm:$0xff] %v1277_v61   ;;  %v1066_v6 = vadd.f32 %v1868_v33, %v1043_v62  ;;  %v1044_v7 = vadd.f32 %v1019_v5, %v819_v58 }
 0x245   :  { %v1069_v36 = vadd.f32 %v1868_v33, %v1046_v4  ;;  %v1084_v9 = vmax.f32 %v1068_v2, 0.0 }
 0x246   :  { %v1067_v8 = vadd.f32 %v1868_v33, %v1044_v7  ;;  %v1082_v49 = vmax.f32 %v1066_v6, 0.0 }
 0x247   :  { %v1085_v10 = vmax.f32 %v1069_v36, 0.0 }
 0x248   :  { %v1083_v11 = vmax.f32 %v1067_v8, 0.0 }
 0x249   :  { %v1292_v54 = vpack.c.bf16 %v1085_v10, %v1084_v9 }
 0x24a   :  { %v1287_v12 = vpack.c.bf16 %v1083_v11, %v1082_v49 }
 0x24b   :  { %1300 = vst [vmem:[#allocation12 + $0x38] sm:$0xff] %v1292_v54  }
 0x24c   :  { %1299 = vst [vmem:[#allocation12 + $0x30] sm:$0xff] %v1287_v12  }
 0x24d   :  { %1637 = shalt.err (!%p1634_p8)
}
 0x24e   :  { %s1638_s23 = scalar_lea.hbm %s1906_s5, 1024 }
 0x24f   :  { %p1639_p9 = scmp.ne.s32.totalorder %s1906_s5, %s1638_s23  ;;  %p1642_p10 = scmp.lt.u32.totalorder %s1638_s23, %s1906_s5 }
 0x251   :  { %p1644_p11 = pnand %p1642_p10, %p1639_p9 }
 0x253   :  { %1647 = shalt.err (!%p1644_p11)
}
 0x254   :  { %1177 = dma.vmem_to_hbm [thread:$0]  %s1172_s19, 1024, %s1906_s5, [#allocation6], %s1657_s28, %s1657_s28, %s1658_s29  }
 0x255   :  { %1654 = dma.done.wait [#allocation6], 1024  }
 0x256   :  { %1655 = vsyncadd [#allocation6], 4294966272 }
 0x257   :  { %1181 = vsyncpa [#allocation5], 1 }
 0x258   :  { %1182 = vsyncpa [#allocation8], 1 }
 0x259   :  { %1183 = vsyncpa [#allocation11], 1 }
 0x25a   :  { %1184 = vsyncpa [#allocation6], 1 }

</bundles_post_ra>
